<compile_context>
chip_gen: v6e
topology: v6e:2x2x1
jax: 0.10.0
libtpu: 0.0.40
codegen_flags: <defaults>
</compile_context>

<pallas_src>
import functools

import jax
import jax.numpy as jnp
from jax.experimental import pallas as pl
from jax.experimental.pallas import tpu as pltpu

LANE = 128
WIDTH_CANDIDATES = (4096, 2048, 1024, 512, 256, 128)
TARGET_BLOCK_BYTES = 4 * 1024 * 1024        # ~4 MiB per block, dtype-independent
SMALL_INPUT_ELEMS = 64 * 1024               # below this, plain XLA is faster
VMEM_LIMIT_BYTES = 32 * 1024 * 1024         # safe on v5e/v6e/v7x


def _requ_kernel(x_ref, o_ref, *, thresh: float):
    # Computed in the input dtype, matching torch.square(F.relu(x - thresh)).
    x = x_ref[...]
    shifted = x - jnp.asarray(thresh, dtype=x.dtype)
    rect = jnp.maximum(shifted, jnp.zeros_like(shifted))
    o_ref[...] = rect * rect


def _round_up(n: int, m: int) -> int:
    return ((n + m - 1) // m) * m


def _requ_jnp(x: jax.Array, thresh: float) -> jax.Array:
    shifted = x - jnp.asarray(thresh, x.dtype)
    rect = jnp.maximum(shifted, jnp.zeros_like(shifted))
    return rect * rect


def _num_tensorcores() -> int:
    """Best-effort TensorCore-per-chip count; defaults to 1 (v5e/v6e)."""
    try:
        info = pltpu.get_tpu_info()
        for name in ("num_tensorcores", "tensorcore_count", "num_cores", "core_count"):
            n = getattr(info, name, None)
            if isinstance(n, int) and n > 0:
                return n
    except Exception:
        pass
    return 1


def requ(x: jax.Array, thresh: float = 0.0) -> jax.Array:
    """ReQU applied elementwise; matches torch.square(F.relu(x - thresh))."""
    orig_shape = x.shape
    dtype = x.dtype
    total = x.size
    if total == 0:
        return x

    # Small-input fallback: pallas_call launch + DMA setup costs a few us;
    # for KB-scale tensors a fused XLA elementwise op is strictly faster.
    if total < SMALL_INPUT_ELEMS:
        return _requ_jnp(x, thresh)

    itemsize = jnp.dtype(dtype).itemsize
    pack = {4: 8, 2: 16, 1: 32}.get(itemsize, 8)  # sublane packing per dtype

    # Prefer the widest lane-dense width that divides total exactly (no pad,
    # no extra HBM pass). Only if nothing divides do we pad, and then the
    # widest width is best since the pad pass is unavoidable anyway.
    width = None
    for cand in WIDTH_CANDIDATES:
        if total % cand == 0:
            width = cand
            break
    if width is None:
        width = WIDTH_CANDIDATES[0]
    padded_total = _round_up(total, width)
    padded = padded_total != total

    flat = jnp.ravel(x)
    if padded:
        flat = jnp.pad(flat, (0, padded_total - total))
    rows = padded_total // width
    x2d = flat.reshape(rows, width)

    # Row tile: ~TARGET_BLOCK_BYTES per block, multiple of the sublane pack.
    block_elems = TARGET_BLOCK_BYTES // itemsize
    tm = max(pack, (block_elems // width) // pack * pack)

    # Megacore-aware minimum-step cap: only shrink blocks when >1 TC exists.
    n_tc = _num_tensorcores()
    if n_tc > 1:
        min_steps = 2 * n_tc
        tm = min(tm, max(pack, _round_up(pl.cdiv(rows, min_steps), pack)))

    # Keep block_shape's sublane dim either pack-aligned or the full extent;
    # Pallas masks the trailing partial block via pl.cdiv.
    if rows <= pack:
        tm = rows
    else:
        tm = max(pack, min(tm, (rows // pack) * pack))
    grid = (pl.cdiv(rows, tm),)

    out2d = pl.pallas_call(
        functools.partial(_requ_kernel, thresh=float(thresh)),
        out_shape=jax.ShapeDtypeStruct((rows, width), dtype),
        grid_spec=pltpu.PrefetchScalarGridSpec(
            num_scalar_prefetch=0,
            grid=grid,
            in_specs=[pl.BlockSpec((tm, width), lambda i: (i, 0))],
            out_specs=pl.BlockSpec((tm, width), lambda i: (i, 0)),
        ),
        compiler_params=pltpu.CompilerParams(
            dimension_semantics=("parallel",),
            vmem_limit_bytes=VMEM_LIMIT_BYTES,
        ),
        cost_estimate=pl.CostEstimate(
            flops=3 * padded_total,
            transcendentals=0,
            bytes_accessed=2 * padded_total * itemsize,
        ),
    )(x2d)

    if padded:
        return out2d.reshape(-1)[:total].reshape(orig_shape)
    return out2d.reshape(orig_shape)


def _requ_reference(x, thresh=0.0):
    return jnp.square(
        jnp.maximum(x - jnp.asarray(thresh, x.dtype), jnp.zeros((), x.dtype))
    ).astype(x.dtype)


if __name__ == "__main__":
    key = jax.random.PRNGKey(0)

    # 1) Small NCHW input (module-typical shape) -> small-input fallback path.
    x = jax.random.normal(key, (2, 4, 16, 16), dtype=jnp.float32)
    y = jax.block_until_ready(requ(x, thresh=0.0))
    assert y.shape == x.shape and y.dtype == x.dtype
    assert jnp.allclose(y, _requ_reference(x, 0.0), atol=1e-6, rtol=1e-6), "mismatch (small, thresh=0)"
    y2 = jax.block_until_ready(requ(x, thresh=0.3))
    assert jnp.allclose(y2, _requ_reference(x, 0.3), atol=1e-6, rtol=1e-6), "mismatch (small, thresh=0.3)"

    # 2) Larger aligned input -> Pallas path, widest no-pad width.
    k2 = jax.random.PRNGKey(0)
    x3 = jax.random.normal(k2, (8, 16, 32, 32), dtype=jnp.float32)  # 131072 elems
    y3 = jax.block_until_ready(requ(x3, thresh=0.1))
    assert y3.shape == x3.shape and y3.dtype == x3.dtype
    assert jnp.allclose(y3, _requ_reference(x3, 0.1), atol=1e-6, rtol=1e-6), "mismatch (pallas aligned)"

    # 3) Large non-128-divisible input -> Pallas pad path with masked tail block.
    k3 = jax.random.PRNGKey(0)
    x4 = jax.random.normal(k3, (1, 1, 300, 301), dtype=jnp.float32)  # 90300 elems
    y4 = jax.block_until_ready(requ(x4, thresh=-0.2))
    assert y4.shape == x4.shape
    assert jnp.allclose(y4, _requ_reference(x4, -0.2), atol=1e-6, rtol=1e-6), "mismatch (pallas padded)"

    # 4) bf16 path through the Pallas kernel (byte-based block sizing, pack=16).
    xb = x3.astype(jnp.bfloat16)
    yb = jax.block_until_ready(requ(xb, thresh=0.25))
    assert yb.dtype == jnp.bfloat16 and yb.shape == xb.shape
    assert jnp.allclose(
        yb.astype(jnp.float32),
        _requ_reference(xb, 0.25).astype(jnp.float32),
        atol=1e-2, rtol=1e-2,
    ), "mismatch (bf16)"

    print("KERNEL_OK")
</pallas_src>

<mosaic_0001>
module attributes {stable_mosaic.version = 11 : i64} {
  func.func @_requ_kernel(%arg0: i32, %arg1: memref<32x4096xf32, #tpu.memory_space<vmem>>, %arg2: memref<32x4096xf32, #tpu.memory_space<vmem>>) attributes {dimension_semantics = [#tpu.dimension_semantics<parallel>], iteration_bounds = array<i64: 1>, scalar_prefetch = 0 : i64, scratch_operands = 0 : i64, tpu.core_type = #tpu.core_type<tc>, window_params = [{transform_indices = @transform_0, window_bounds = array<i64: 32, 4096>}, {transform_indices = @transform_1, window_bounds = array<i64: 32, 4096>}]} {
    %c0 = arith.constant 0 : index
    %c0_0 = arith.constant 0 : index
    %0 = vector.load %arg1[%c0, %c0_0] : memref<32x4096xf32, #tpu.memory_space<vmem>>, vector<32x4096xf32>
    %cst = arith.constant 1.000000e-01 : f32
    %1 = vector.broadcast %cst : f32 to vector<32x4096xf32>
    %2 = arith.subf %0, %1 : vector<32x4096xf32>
    %cst_1 = arith.constant 0.000000e+00 : f32
    %3 = vector.broadcast %cst_1 : f32 to vector<32x4096xf32>
    %4 = arith.maximumf %2, %3 : vector<32x4096xf32>
    %5 = arith.mulf %4, %4 : vector<32x4096xf32>
    %c0_2 = arith.constant 0 : index
    %c0_3 = arith.constant 0 : index
    %6 = vector.load %arg2[%c0_2, %c0_3] : memref<32x4096xf32, #tpu.memory_space<vmem>>, vector<32x4096xf32>
    tpu.vector_store %arg2[%c0_2, %c0_3], %5 {strides = array<i32>} : memref<32x4096xf32, #tpu.memory_space<vmem>>, vector<32x4096xf32>,
    return
  }
  func.func @transform_0(%arg0: i32) -> (i32, i32) {
    %c0_i32 = arith.constant 0 : i32
    %c0_i32_0 = arith.constant 0 : i32
    return %arg0, %c0_i32 : i32, i32
  }
  func.func @transform_1(%arg0: i32) -> (i32, i32) {
    %c0_i32 = arith.constant 0 : i32
    %c0_i32_0 = arith.constant 0 : i32
    return %arg0, %c0_i32 : i32, i32
  }
}

</mosaic_0001>

<bundles_post_ra>
// kernel: tpu_custom_call.1
= control target key start
LH: loop header
LB: loop body
LE: loop exit
PB: predicated region body
PF: predicated region fallthrough
CT: control target
= control target key end

     0   :  { %6 = vsyncpa [#allocation3], 0  ;;  %s882_s0 = inlined_call_operand.hbm [shape: f32[32,4096], index: 0, kind: input, shape index: {}]   ;;  %s883_s1 = inlined_call_operand.hbm [shape: f32[32,4096], index: 1, kind: output, shape index: {}]  }
   0x1   :  { %7 = vsyncpa [#allocation4], 0  ;;  %s856_s6 = smov [#allocation2]  }
   0x2   :  { %s13_s7 = sshll.u32 %s856_s6, 4  ;;  %s14_s7 = int_to_ptr.vmem [resolvable:$true] %s13_s7 }
   0x3   :  { %s820_s8 = scalar_lea.vmem %s14_s7, 16384  ;;  %p825_p1 = scmp.lt.s32.totalorder %s14_s7, %s14_s7 }
   0x4   :  { %p821_p0 = scmp.ne.s32.totalorder %s14_s7, %s820_s8  ;;  %p826_p2 = scmp.lt.s32.totalorder %s820_s8, %s820_s8 }
   0x6   :  { %p827_p3 = por %p826_p2, %p825_p1 }
   0x8   :  { %p828_p4 = pnand %p827_p3, %p821_p0 }
   0xa   :  { %831 = shalt.err (!%p828_p4)
}
   0xb   :  { %s857_s9 = smov 4096   ;;  %s858_s10 = smov 256  }
   0xc   :  { %19 = dma.hbm_to_vmem [thread:$0]  %s882_s0, 16384, %s14_s7, [#allocation3], %s857_s9, %s857_s9, %s858_s10  }
   0xd   :  { %852 = dma.done.wait [#allocation3], 16384  }
   0xe   :  { %853 = vsyncadd [#allocation3], 4294950912  ;;  %v23_v0 = vld [vmem:[#allocation2] sm:$0xff]  ;;  %v24_v1 = vld [vmem:[#allocation2 + $0x8] sm:$0xff]  ;;  %s859_s0 = smov [#allocation5]  }
   0xf   :  { %v25_v2 = vld [vmem:[#allocation2 + $0x10] sm:$0xff]  ;;  %v680_v3 = vadd.f32 -0.1, %v23_v0  ;;  %v681_v4 = vadd.f32 -0.1, %v24_v1  ;;  %v26_v6 = vld [vmem:[#allocation2 + $0x18] sm:$0xff] }
  0x10   :  { %v682_v5 = vadd.f32 -0.1, %v25_v2  ;;  %v27_v7 = vld [vmem:[#allocation2 + $0x20] sm:$0xff]  ;;  %v28_v8 = vld [vmem:[#allocation2 + $0x28] sm:$0xff]  ;;  %v683_v12 = vadd.f32 -0.1, %v26_v6 }
  0x11   :  { %v279_v9 = vmax.f32 %v680_v3, 0.0  ;;  %v280_v10 = vmax.f32 %v681_v4, 0.0  ;;  %v29_v13 = vld [vmem:[#allocation2 + $0x30] sm:$0xff]  ;;  %v684_v14 = vadd.f32 -0.1, %v27_v7  ;;  %v30_v21 = vld [vmem:[#allocation2 + $0x38] sm:$0xff] }
  0x12   :  { %v281_v11 = vmax.f32 %v682_v5, 0.0  ;;  %v685_v15 = vadd.f32 -0.1, %v28_v8  ;;  %v686_v16 = vadd.f32 -0.1, %v29_v13  ;;  %v282_v20 = vmax.f32 %v683_v12, 0.0 }
  0x13   :  { %v407_v17 = vmul.f32 %v279_v9, %v279_v9  ;;  %v408_v18 = vmul.f32 %v280_v10, %v280_v10  ;;  %v31_v22 = vld [vmem:[#allocation2 + $0x40] sm:$0xff]  ;;  %v32_v23 = vld [vmem:[#allocation2 + $0x48] sm:$0xff]  ;;  %v283_v24 = vmax.f32 %v684_v14, 0.0  ;;  %v687_v27 = vadd.f32 -0.1, %v30_v21  ;;  %v33_v28 = vld [vmem:[#allocation2 + $0x50] sm:$0xff] }
  0x14   :  { %v409_v19 = vmul.f32 %v281_v11, %v281_v11  ;;  %v284_v25 = vmax.f32 %v685_v15, 0.0  ;;  %v285_v26 = vmax.f32 %v686_v16, 0.0  ;;  %v410_v29 = vmul.f32 %v282_v20, %v282_v20  ;;  %v34_v37 = vld [vmem:[#allocation2 + $0x58] sm:$0xff]  ;;  %v35_v38 = vld [vmem:[#allocation2 + $0x60] sm:$0xff]  ;;  %v36_v39 = vld [vmem:[#allocation2 + $0x68] sm:$0xff]  ;;  %s668_s13 = sshll.u32 %s859_s0, 4  ;;  %s669_s13 = int_to_ptr.vmem [resolvable:$true] %s668_s13 }
  0x15   :  { %535 = vst [vmem:[#allocation5] sm:$0xff] %v407_v17  ;;  %536 = vst [vmem:[#allocation5 + $0x8] sm:$0xff] %v408_v18  ;;  %v688_v30 = vadd.f32 -0.1, %v31_v22  ;;  %v689_v31 = vadd.f32 -0.1, %v32_v23  ;;  %v411_v33 = vmul.f32 %v283_v24, %v283_v24  ;;  %p837_p6 = scmp.lt.s32.totalorder %s669_s13, %s669_s13 }
  0x16   :  { %537 = vst [vmem:[#allocation5 + $0x10] sm:$0xff] %v409_v19  ;;  %v690_v32 = vadd.f32 -0.1, %v33_v28  ;;  %v412_v34 = vmul.f32 %v284_v25, %v284_v25  ;;  %v413_v35 = vmul.f32 %v285_v26, %v285_v26  ;;  %v286_v36 = vmax.f32 %v687_v27, 0.0  ;;  %538 = vst [vmem:[#allocation5 + $0x18] sm:$0xff] %v410_v29  ;;  %v37_v44 = vld [vmem:[#allocation2 + $0x70] sm:$0xff] }
  0x17   :  { %v287_v40 = vmax.f32 %v688_v30, 0.0  ;;  %v288_v41 = vmax.f32 %v689_v31, 0.0  ;;  %v691_v43 = vadd.f32 -0.1, %v34_v37  ;;  %539 = vst [vmem:[#allocation5 + $0x20] sm:$0xff] %v411_v33  ;;  %v38_v53 = vld [vmem:[#allocation2 + $0x78] sm:$0xff] }
  0x18   :  { %v289_v42 = vmax.f32 %v690_v32, 0.0  ;;  %540 = vst [vmem:[#allocation5 + $0x28] sm:$0xff] %v412_v34  ;;  %541 = vst [vmem:[#allocation5 + $0x30] sm:$0xff] %v413_v35  ;;  %v414_v45 = vmul.f32 %v286_v36, %v286_v36  ;;  %v692_v46 = vadd.f32 -0.1, %v35_v38  ;;  %v39_v54 = vld [vmem:[#allocation2 + $0x80] sm:$0xff] }
  0x19   :  { %v693_v47 = vadd.f32 -0.1, %v36_v39  ;;  %v694_v48 = vadd.f32 -0.1, %v37_v44  ;;  %v415_v49 = vmul.f32 %v287_v40, %v287_v40  ;;  %v416_v50 = vmul.f32 %v288_v41, %v288_v41  ;;  %v40_v55 = vld [vmem:[#allocation2 + $0x88] sm:$0xff]  ;;  %v41_v60 = vld [vmem:[#allocation2 + $0x90] sm:$0xff] }
  0x1a   :  { %v417_v51 = vmul.f32 %v289_v42, %v289_v42  ;;  %v290_v52 = vmax.f32 %v691_v43, 0.0  ;;  %542 = vst [vmem:[#allocation5 + $0x38] sm:$0xff] %v414_v45  ;;  %v291_v56 = vmax.f32 %v692_v46, 0.0  ;;  %v695_v59 = vadd.f32 -0.1, %v38_v53  ;;  %v42_v5 = vld [vmem:[#allocation2 + $0x98] sm:$0xff] }
  0x1b   :  { %v292_v57 = vmax.f32 %v693_v47, 0.0  ;;  %v293_v58 = vmax.f32 %v694_v48, 0.0  ;;  %543 = vst [vmem:[#allocation5 + $0x40] sm:$0xff] %v415_v49  ;;  %544 = vst [vmem:[#allocation5 + $0x48] sm:$0xff] %v416_v50  ;;  %v696_v62 = vadd.f32 -0.1, %v39_v54 }
  0x1c   :  { %545 = vst [vmem:[#allocation5 + $0x50] sm:$0xff] %v417_v51  ;;  %v418_v61 = vmul.f32 %v290_v52, %v290_v52  ;;  %v697_v63 = vadd.f32 -0.1, %v40_v55  ;;  %v698_v0 = vadd.f32 -0.1, %v41_v60  ;;  %v419_v1 = vmul.f32 %v291_v56, %v291_v56  ;;  %v43_v6 = vld [vmem:[#allocation2 + $0xa0] sm:$0xff] }
  0x1d   :  { %v420_v2 = vmul.f32 %v292_v57, %v292_v57  ;;  %v421_v3 = vmul.f32 %v293_v58, %v293_v58  ;;  %v294_v4 = vmax.f32 %v695_v59, 0.0  ;;  %v44_v7 = vld [vmem:[#allocation2 + $0xa8] sm:$0xff]  ;;  %v295_v8 = vmax.f32 %v696_v62, 0.0  ;;  %v45_v12 = vld [vmem:[#allocation2 + $0xb0] sm:$0xff]  ;;  %v46_v21 = vld [vmem:[#allocation2 + $0xb8] sm:$0xff]  ;;  %s832_s14 = scalar_lea.vmem %s669_s13, 16384 }
  0x1e   :  { %546 = vst [vmem:[#allocation5 + $0x58] sm:$0xff] %v418_v61  ;;  %v296_v9 = vmax.f32 %v697_v63, 0.0  ;;  %v297_v10 = vmax.f32 %v698_v0, 0.0  ;;  %v699_v11 = vadd.f32 -0.1, %v42_v5  ;;  %547 = vst [vmem:[#allocation5 + $0x60] sm:$0xff] %v419_v1  ;;  %p833_p5 = scmp.ne.s32.totalorder %s669_s13, %s832_s14  ;;  %p838_p7 = scmp.lt.s32.totalorder %s832_s14, %s832_s14 }
  0x1f   :  { %548 = vst [vmem:[#allocation5 + $0x68] sm:$0xff] %v420_v2  ;;  %549 = vst [vmem:[#allocation5 + $0x70] sm:$0xff] %v421_v3  ;;  %v422_v13 = vmul.f32 %v294_v4, %v294_v4  ;;  %v700_v14 = vadd.f32 -0.1, %v43_v6  ;;  %v701_v15 = vadd.f32 -0.1, %v44_v7  ;;  %v423_v17 = vmul.f32 %v295_v8, %v295_v8 }
  0x20   :  { %v702_v16 = vadd.f32 -0.1, %v45_v12  ;;  %v424_v18 = vmul.f32 %v296_v9, %v296_v9  ;;  %v425_v19 = vmul.f32 %v297_v10, %v297_v10  ;;  %v298_v20 = vmax.f32 %v699_v11, 0.0  ;;  %v47_v22 = vld [vmem:[#allocation2 + $0xc0] sm:$0xff]  ;;  %v48_v23 = vld [vmem:[#allocation2 + $0xc8] sm:$0xff]  ;;  %v49_v28 = vld [vmem:[#allocation2 + $0xd0] sm:$0xff]  ;;  %p839_p8 = por %p838_p7, %p837_p6 }
  0x21   :  { %550 = vst [vmem:[#allocation5 + $0x78] sm:$0xff] %v422_v13  ;;  %v299_v24 = vmax.f32 %v700_v14, 0.0  ;;  %v300_v25 = vmax.f32 %v701_v15, 0.0  ;;  %v703_v27 = vadd.f32 -0.1, %v46_v21  ;;  %551 = vst [vmem:[#allocation5 + $0x80] sm:$0xff] %v423_v17 }
  0x22   :  { %v301_v26 = vmax.f32 %v702_v16, 0.0  ;;  %552 = vst [vmem:[#allocation5 + $0x88] sm:$0xff] %v424_v18  ;;  %553 = vst [vmem:[#allocation5 + $0x90] sm:$0xff] %v425_v19  ;;  %v426_v29 = vmul.f32 %v298_v20, %v298_v20  ;;  %v704_v30 = vadd.f32 -0.1, %v47_v22  ;;  %v50_v37 = vld [vmem:[#allocation2 + $0xd8] sm:$0xff]  ;;  %p840_p9 = pnand %p839_p8, %p833_p5 }
  0x23   :  { %v705_v31 = vadd.f32 -0.1, %v48_v23  ;;  %v706_v32 = vadd.f32 -0.1, %v49_v28  ;;  %v427_v33 = vmul.f32 %v299_v24, %v299_v24  ;;  %v428_v34 = vmul.f32 %v300_v25, %v300_v25  ;;  %v51_v38 = vld [vmem:[#allocation2 + $0xe0] sm:$0xff]  ;;  %v52_v39 = vld [vmem:[#allocation2 + $0xe8] sm:$0xff] }
  0x24   :  { %v429_v35 = vmul.f32 %v301_v26, %v301_v26  ;;  %v302_v36 = vmax.f32 %v703_v27, 0.0  ;;  %554 = vst [vmem:[#allocation5 + $0x98] sm:$0xff] %v426_v29  ;;  %v303_v40 = vmax.f32 %v704_v30, 0.0  ;;  %v707_v43 = vadd.f32 -0.1, %v50_v37  ;;  %v53_v44 = vld [vmem:[#allocation2 + $0xf0] sm:$0xff] }
  0x25   :  { %v304_v41 = vmax.f32 %v705_v31, 0.0  ;;  %v305_v42 = vmax.f32 %v706_v32, 0.0  ;;  %555 = vst [vmem:[#allocation5 + $0xa0] sm:$0xff] %v427_v33  ;;  %556 = vst [vmem:[#allocation5 + $0xa8] sm:$0xff] %v428_v34  ;;  %v708_v46 = vadd.f32 -0.1, %v51_v38 }
  0x26   :  { %557 = vst [vmem:[#allocation5 + $0xb0] sm:$0xff] %v429_v35  ;;  %v430_v45 = vmul.f32 %v302_v36, %v302_v36  ;;  %v709_v47 = vadd.f32 -0.1, %v52_v39  ;;  %v710_v48 = vadd.f32 -0.1, %v53_v44  ;;  %v431_v49 = vmul.f32 %v303_v40, %v303_v40  ;;  %v54_v53 = vld [vmem:[#allocation2 + $0xf8] sm:$0xff] }
  0x27   :  { %v432_v50 = vmul.f32 %v304_v41, %v304_v41  ;;  %v433_v51 = vmul.f32 %v305_v42, %v305_v42  ;;  %v306_v52 = vmax.f32 %v707_v43, 0.0  ;;  %v55_v54 = vld [vmem:[#allocation2 + $0x100] sm:$0xff]  ;;  %v56_v55 = vld [vmem:[#allocation2 + $0x108] sm:$0xff]  ;;  %v307_v56 = vmax.f32 %v708_v46, 0.0  ;;  %v57_v60 = vld [vmem:[#allocation2 + $0x110] sm:$0xff] }
  0x28   :  { %558 = vst [vmem:[#allocation5 + $0xb8] sm:$0xff] %v430_v45  ;;  %v308_v57 = vmax.f32 %v709_v47, 0.0  ;;  %v309_v58 = vmax.f32 %v710_v48, 0.0  ;;  %v711_v59 = vadd.f32 -0.1, %v54_v53  ;;  %559 = vst [vmem:[#allocation5 + $0xc0] sm:$0xff] %v431_v49 }
  0x29   :  { %560 = vst [vmem:[#allocation5 + $0xc8] sm:$0xff] %v432_v50  ;;  %561 = vst [vmem:[#allocation5 + $0xd0] sm:$0xff] %v433_v51  ;;  %v434_v61 = vmul.f32 %v306_v52, %v306_v52  ;;  %v712_v62 = vadd.f32 -0.1, %v55_v54  ;;  %v713_v63 = vadd.f32 -0.1, %v56_v55  ;;  %v435_v1 = vmul.f32 %v307_v56, %v307_v56 }
  0x2a   :  { %v714_v0 = vadd.f32 -0.1, %v57_v60  ;;  %v436_v2 = vmul.f32 %v308_v57, %v308_v57  ;;  %v437_v3 = vmul.f32 %v309_v58, %v309_v58  ;;  %v310_v4 = vmax.f32 %v711_v59, 0.0  ;;  %v58_v5 = vld [vmem:[#allocation2 + $0x118] sm:$0xff]  ;;  %v59_v6 = vld [vmem:[#allocation2 + $0x120] sm:$0xff]  ;;  %v60_v7 = vld [vmem:[#allocation2 + $0x128] sm:$0xff] }
  0x2b   :  { %562 = vst [vmem:[#allocation5 + $0xd8] sm:$0xff] %v434_v61  ;;  %v311_v8 = vmax.f32 %v712_v62, 0.0  ;;  %v312_v9 = vmax.f32 %v713_v63, 0.0  ;;  %v715_v11 = vadd.f32 -0.1, %v58_v5  ;;  %v61_v12 = vld [vmem:[#allocation2 + $0x130] sm:$0xff] }
  0x2c   :  { %v313_v10 = vmax.f32 %v714_v0, 0.0  ;;  %563 = vst [vmem:[#allocation5 + $0xe0] sm:$0xff] %v435_v1  ;;  %564 = vst [vmem:[#allocation5 + $0xe8] sm:$0xff] %v436_v2  ;;  %v438_v13 = vmul.f32 %v310_v4, %v310_v4  ;;  %v716_v14 = vadd.f32 -0.1, %v59_v6  ;;  %v62_v21 = vld [vmem:[#allocation2 + $0x138] sm:$0xff] }
  0x2d   :  { %565 = vst [vmem:[#allocation5 + $0xf0] sm:$0xff] %v437_v3  ;;  %v717_v15 = vadd.f32 -0.1, %v60_v7  ;;  %v718_v16 = vadd.f32 -0.1, %v61_v12  ;;  %v439_v17 = vmul.f32 %v311_v8, %v311_v8  ;;  %v440_v18 = vmul.f32 %v312_v9, %v312_v9  ;;  %v63_v22 = vld [vmem:[#allocation2 + $0x140] sm:$0xff] }
  0x2e   :  { %v441_v19 = vmul.f32 %v313_v10, %v313_v10  ;;  %v314_v20 = vmax.f32 %v715_v11, 0.0  ;;  %v64_v23 = vld [vmem:[#allocation2 + $0x148] sm:$0xff]  ;;  %566 = vst [vmem:[#allocation5 + $0xf8] sm:$0xff] %v438_v13  ;;  %v315_v24 = vmax.f32 %v716_v14, 0.0  ;;  %v719_v27 = vadd.f32 -0.1, %v62_v21 }
  0x2f   :  { %v316_v25 = vmax.f32 %v717_v15, 0.0  ;;  %v317_v26 = vmax.f32 %v718_v16, 0.0  ;;  %v65_v28 = vld [vmem:[#allocation2 + $0x150] sm:$0xff]  ;;  %567 = vst [vmem:[#allocation5 + $0x100] sm:$0xff] %v439_v17  ;;  %568 = vst [vmem:[#allocation5 + $0x108] sm:$0xff] %v440_v18  ;;  %v66_v37 = vld [vmem:[#allocation2 + $0x158] sm:$0xff] }
  0x30   :  { %569 = vst [vmem:[#allocation5 + $0x110] sm:$0xff] %v441_v19  ;;  %v442_v29 = vmul.f32 %v314_v20, %v314_v20  ;;  %v720_v30 = vadd.f32 -0.1, %v63_v22  ;;  %v721_v31 = vadd.f32 -0.1, %v64_v23  ;;  %v443_v33 = vmul.f32 %v315_v24, %v315_v24  ;;  %v67_v38 = vld [vmem:[#allocation2 + $0x160] sm:$0xff] }
  0x31   :  { %v722_v32 = vadd.f32 -0.1, %v65_v28  ;;  %v444_v34 = vmul.f32 %v316_v25, %v316_v25  ;;  %v445_v35 = vmul.f32 %v317_v26, %v317_v26  ;;  %v318_v36 = vmax.f32 %v719_v27, 0.0  ;;  %v68_v39 = vld [vmem:[#allocation2 + $0x168] sm:$0xff]  ;;  %v69_v44 = vld [vmem:[#allocation2 + $0x170] sm:$0xff]  ;;  %v70_v53 = vld [vmem:[#allocation2 + $0x178] sm:$0xff] }
  0x32   :  { %570 = vst [vmem:[#allocation5 + $0x118] sm:$0xff] %v442_v29  ;;  %v319_v40 = vmax.f32 %v720_v30, 0.0  ;;  %v320_v41 = vmax.f32 %v721_v31, 0.0  ;;  %v723_v43 = vadd.f32 -0.1, %v66_v37  ;;  %571 = vst [vmem:[#allocation5 + $0x120] sm:$0xff] %v443_v33 }
  0x33   :  { %v321_v42 = vmax.f32 %v722_v32, 0.0  ;;  %572 = vst [vmem:[#allocation5 + $0x128] sm:$0xff] %v444_v34  ;;  %573 = vst [vmem:[#allocation5 + $0x130] sm:$0xff] %v445_v35  ;;  %v446_v45 = vmul.f32 %v318_v36, %v318_v36  ;;  %v724_v46 = vadd.f32 -0.1, %v67_v38  ;;  %v71_v54 = vld [vmem:[#allocation2 + $0x180] sm:$0xff] }
  0x34   :  { %v725_v47 = vadd.f32 -0.1, %v68_v39  ;;  %v726_v48 = vadd.f32 -0.1, %v69_v44  ;;  %v447_v49 = vmul.f32 %v319_v40, %v319_v40  ;;  %v448_v50 = vmul.f32 %v320_v41, %v320_v41  ;;  %v72_v55 = vld [vmem:[#allocation2 + $0x188] sm:$0xff]  ;;  %v73_v60 = vld [vmem:[#allocation2 + $0x190] sm:$0xff] }
  0x35   :  { %v449_v51 = vmul.f32 %v321_v42, %v321_v42  ;;  %v322_v52 = vmax.f32 %v723_v43, 0.0  ;;  %574 = vst [vmem:[#allocation5 + $0x138] sm:$0xff] %v446_v45  ;;  %v323_v56 = vmax.f32 %v724_v46, 0.0  ;;  %v727_v59 = vadd.f32 -0.1, %v70_v53  ;;  %v74_v5 = vld [vmem:[#allocation2 + $0x198] sm:$0xff] }
  0x36   :  { %v324_v57 = vmax.f32 %v725_v47, 0.0  ;;  %v325_v58 = vmax.f32 %v726_v48, 0.0  ;;  %575 = vst [vmem:[#allocation5 + $0x140] sm:$0xff] %v447_v49  ;;  %576 = vst [vmem:[#allocation5 + $0x148] sm:$0xff] %v448_v50  ;;  %v728_v62 = vadd.f32 -0.1, %v71_v54 }
  0x37   :  { %577 = vst [vmem:[#allocation5 + $0x150] sm:$0xff] %v449_v51  ;;  %v450_v61 = vmul.f32 %v322_v52, %v322_v52  ;;  %v729_v63 = vadd.f32 -0.1, %v72_v55  ;;  %v730_v0 = vadd.f32 -0.1, %v73_v60  ;;  %v451_v1 = vmul.f32 %v323_v56, %v323_v56  ;;  %v75_v6 = vld [vmem:[#allocation2 + $0x1a0] sm:$0xff] }
  0x38   :  { %v452_v2 = vmul.f32 %v324_v57, %v324_v57  ;;  %v453_v3 = vmul.f32 %v325_v58, %v325_v58  ;;  %v326_v4 = vmax.f32 %v727_v59, 0.0  ;;  %v76_v7 = vld [vmem:[#allocation2 + $0x1a8] sm:$0xff]  ;;  %v327_v8 = vmax.f32 %v728_v62, 0.0  ;;  %v77_v12 = vld [vmem:[#allocation2 + $0x1b0] sm:$0xff]  ;;  %v78_v21 = vld [vmem:[#allocation2 + $0x1b8] sm:$0xff] }
  0x39   :  { %578 = vst [vmem:[#allocation5 + $0x158] sm:$0xff] %v450_v61  ;;  %v328_v9 = vmax.f32 %v729_v63, 0.0  ;;  %v329_v10 = vmax.f32 %v730_v0, 0.0  ;;  %v731_v11 = vadd.f32 -0.1, %v74_v5  ;;  %579 = vst [vmem:[#allocation5 + $0x160] sm:$0xff] %v451_v1 }
  0x3a   :  { %580 = vst [vmem:[#allocation5 + $0x168] sm:$0xff] %v452_v2  ;;  %581 = vst [vmem:[#allocation5 + $0x170] sm:$0xff] %v453_v3  ;;  %v454_v13 = vmul.f32 %v326_v4, %v326_v4  ;;  %v732_v14 = vadd.f32 -0.1, %v75_v6  ;;  %v733_v15 = vadd.f32 -0.1, %v76_v7  ;;  %v455_v17 = vmul.f32 %v327_v8, %v327_v8 }
  0x3b   :  { %v734_v16 = vadd.f32 -0.1, %v77_v12  ;;  %v456_v18 = vmul.f32 %v328_v9, %v328_v9  ;;  %v457_v19 = vmul.f32 %v329_v10, %v329_v10  ;;  %v330_v20 = vmax.f32 %v731_v11, 0.0  ;;  %v79_v22 = vld [vmem:[#allocation2 + $0x1c0] sm:$0xff]  ;;  %v80_v23 = vld [vmem:[#allocation2 + $0x1c8] sm:$0xff]  ;;  %v81_v28 = vld [vmem:[#allocation2 + $0x1d0] sm:$0xff] }
  0x3c   :  { %582 = vst [vmem:[#allocation5 + $0x178] sm:$0xff] %v454_v13  ;;  %v331_v24 = vmax.f32 %v732_v14, 0.0  ;;  %v332_v25 = vmax.f32 %v733_v15, 0.0  ;;  %v735_v27 = vadd.f32 -0.1, %v78_v21  ;;  %583 = vst [vmem:[#allocation5 + $0x180] sm:$0xff] %v455_v17 }
  0x3d   :  { %v333_v26 = vmax.f32 %v734_v16, 0.0  ;;  %584 = vst [vmem:[#allocation5 + $0x188] sm:$0xff] %v456_v18  ;;  %585 = vst [vmem:[#allocation5 + $0x190] sm:$0xff] %v457_v19  ;;  %v458_v29 = vmul.f32 %v330_v20, %v330_v20  ;;  %v736_v30 = vadd.f32 -0.1, %v79_v22  ;;  %v82_v37 = vld [vmem:[#allocation2 + $0x1d8] sm:$0xff] }
  0x3e   :  { %v737_v31 = vadd.f32 -0.1, %v80_v23  ;;  %v738_v32 = vadd.f32 -0.1, %v81_v28  ;;  %v459_v33 = vmul.f32 %v331_v24, %v331_v24  ;;  %v460_v34 = vmul.f32 %v332_v25, %v332_v25  ;;  %v83_v38 = vld [vmem:[#allocation2 + $0x1e0] sm:$0xff]  ;;  %v84_v39 = vld [vmem:[#allocation2 + $0x1e8] sm:$0xff] }
  0x3f   :  { %v461_v35 = vmul.f32 %v333_v26, %v333_v26  ;;  %v334_v36 = vmax.f32 %v735_v27, 0.0  ;;  %586 = vst [vmem:[#allocation5 + $0x198] sm:$0xff] %v458_v29  ;;  %v335_v40 = vmax.f32 %v736_v30, 0.0  ;;  %v739_v43 = vadd.f32 -0.1, %v82_v37  ;;  %v85_v44 = vld [vmem:[#allocation2 + $0x1f0] sm:$0xff] }
  0x40   :  { %v336_v41 = vmax.f32 %v737_v31, 0.0  ;;  %v337_v42 = vmax.f32 %v738_v32, 0.0  ;;  %587 = vst [vmem:[#allocation5 + $0x1a0] sm:$0xff] %v459_v33  ;;  %588 = vst [vmem:[#allocation5 + $0x1a8] sm:$0xff] %v460_v34  ;;  %v740_v46 = vadd.f32 -0.1, %v83_v38 }
  0x41   :  { %589 = vst [vmem:[#allocation5 + $0x1b0] sm:$0xff] %v461_v35  ;;  %v462_v45 = vmul.f32 %v334_v36, %v334_v36  ;;  %v741_v47 = vadd.f32 -0.1, %v84_v39  ;;  %v742_v48 = vadd.f32 -0.1, %v85_v44  ;;  %v463_v49 = vmul.f32 %v335_v40, %v335_v40  ;;  %v86_v53 = vld [vmem:[#allocation2 + $0x1f8] sm:$0xff] }
  0x42   :  { %v464_v50 = vmul.f32 %v336_v41, %v336_v41  ;;  %v465_v51 = vmul.f32 %v337_v42, %v337_v42  ;;  %v338_v52 = vmax.f32 %v739_v43, 0.0  ;;  %v87_v54 = vld [vmem:[#allocation2 + $0x200] sm:$0xff]  ;;  %v88_v55 = vld [vmem:[#allocation2 + $0x208] sm:$0xff]  ;;  %v339_v56 = vmax.f32 %v740_v46, 0.0  ;;  %v89_v60 = vld [vmem:[#allocation2 + $0x210] sm:$0xff] }
  0x43   :  { %590 = vst [vmem:[#allocation5 + $0x1b8] sm:$0xff] %v462_v45  ;;  %v340_v57 = vmax.f32 %v741_v47, 0.0  ;;  %v341_v58 = vmax.f32 %v742_v48, 0.0  ;;  %v743_v59 = vadd.f32 -0.1, %v86_v53  ;;  %591 = vst [vmem:[#allocation5 + $0x1c0] sm:$0xff] %v463_v49 }
  0x44   :  { %592 = vst [vmem:[#allocation5 + $0x1c8] sm:$0xff] %v464_v50  ;;  %593 = vst [vmem:[#allocation5 + $0x1d0] sm:$0xff] %v465_v51  ;;  %v466_v61 = vmul.f32 %v338_v52, %v338_v52  ;;  %v744_v62 = vadd.f32 -0.1, %v87_v54  ;;  %v745_v63 = vadd.f32 -0.1, %v88_v55  ;;  %v467_v1 = vmul.f32 %v339_v56, %v339_v56 }
  0x45   :  { %v746_v0 = vadd.f32 -0.1, %v89_v60  ;;  %v468_v2 = vmul.f32 %v340_v57, %v340_v57  ;;  %v469_v3 = vmul.f32 %v341_v58, %v341_v58  ;;  %v342_v4 = vmax.f32 %v743_v59, 0.0  ;;  %v90_v5 = vld [vmem:[#allocation2 + $0x218] sm:$0xff]  ;;  %v91_v6 = vld [vmem:[#allocation2 + $0x220] sm:$0xff]  ;;  %v92_v7 = vld [vmem:[#allocation2 + $0x228] sm:$0xff] }
  0x46   :  { %594 = vst [vmem:[#allocation5 + $0x1d8] sm:$0xff] %v466_v61  ;;  %v343_v8 = vmax.f32 %v744_v62, 0.0  ;;  %v344_v9 = vmax.f32 %v745_v63, 0.0  ;;  %v747_v11 = vadd.f32 -0.1, %v90_v5  ;;  %v93_v12 = vld [vmem:[#allocation2 + $0x230] sm:$0xff] }
  0x47   :  { %v345_v10 = vmax.f32 %v746_v0, 0.0  ;;  %595 = vst [vmem:[#allocation5 + $0x1e0] sm:$0xff] %v467_v1  ;;  %596 = vst [vmem:[#allocation5 + $0x1e8] sm:$0xff] %v468_v2  ;;  %v470_v13 = vmul.f32 %v342_v4, %v342_v4  ;;  %v748_v14 = vadd.f32 -0.1, %v91_v6  ;;  %v94_v21 = vld [vmem:[#allocation2 + $0x238] sm:$0xff] }
  0x48   :  { %597 = vst [vmem:[#allocation5 + $0x1f0] sm:$0xff] %v469_v3  ;;  %v749_v15 = vadd.f32 -0.1, %v92_v7  ;;  %v750_v16 = vadd.f32 -0.1, %v93_v12  ;;  %v471_v17 = vmul.f32 %v343_v8, %v343_v8  ;;  %v472_v18 = vmul.f32 %v344_v9, %v344_v9  ;;  %v95_v22 = vld [vmem:[#allocation2 + $0x240] sm:$0xff] }
  0x49   :  { %v473_v19 = vmul.f32 %v345_v10, %v345_v10  ;;  %v346_v20 = vmax.f32 %v747_v11, 0.0  ;;  %v96_v23 = vld [vmem:[#allocation2 + $0x248] sm:$0xff]  ;;  %598 = vst [vmem:[#allocation5 + $0x1f8] sm:$0xff] %v470_v13  ;;  %v347_v24 = vmax.f32 %v748_v14, 0.0  ;;  %v751_v27 = vadd.f32 -0.1, %v94_v21 }
  0x4a   :  { %v348_v25 = vmax.f32 %v749_v15, 0.0  ;;  %v349_v26 = vmax.f32 %v750_v16, 0.0  ;;  %v97_v28 = vld [vmem:[#allocation2 + $0x250] sm:$0xff]  ;;  %599 = vst [vmem:[#allocation5 + $0x200] sm:$0xff] %v471_v17  ;;  %600 = vst [vmem:[#allocation5 + $0x208] sm:$0xff] %v472_v18  ;;  %v98_v37 = vld [vmem:[#allocation2 + $0x258] sm:$0xff] }
  0x4b   :  { %601 = vst [vmem:[#allocation5 + $0x210] sm:$0xff] %v473_v19  ;;  %v474_v29 = vmul.f32 %v346_v20, %v346_v20  ;;  %v752_v30 = vadd.f32 -0.1, %v95_v22  ;;  %v753_v31 = vadd.f32 -0.1, %v96_v23  ;;  %v475_v33 = vmul.f32 %v347_v24, %v347_v24  ;;  %v99_v38 = vld [vmem:[#allocation2 + $0x260] sm:$0xff] }
  0x4c   :  { %v754_v32 = vadd.f32 -0.1, %v97_v28  ;;  %v476_v34 = vmul.f32 %v348_v25, %v348_v25  ;;  %v477_v35 = vmul.f32 %v349_v26, %v349_v26  ;;  %v350_v36 = vmax.f32 %v751_v27, 0.0  ;;  %v100_v39 = vld [vmem:[#allocation2 + $0x268] sm:$0xff]  ;;  %v101_v44 = vld [vmem:[#allocation2 + $0x270] sm:$0xff]  ;;  %v102_v53 = vld [vmem:[#allocation2 + $0x278] sm:$0xff] }
  0x4d   :  { %602 = vst [vmem:[#allocation5 + $0x218] sm:$0xff] %v474_v29  ;;  %v351_v40 = vmax.f32 %v752_v30, 0.0  ;;  %v352_v41 = vmax.f32 %v753_v31, 0.0  ;;  %v755_v43 = vadd.f32 -0.1, %v98_v37  ;;  %603 = vst [vmem:[#allocation5 + $0x220] sm:$0xff] %v475_v33 }
  0x4e   :  { %v353_v42 = vmax.f32 %v754_v32, 0.0  ;;  %604 = vst [vmem:[#allocation5 + $0x228] sm:$0xff] %v476_v34  ;;  %605 = vst [vmem:[#allocation5 + $0x230] sm:$0xff] %v477_v35  ;;  %v478_v45 = vmul.f32 %v350_v36, %v350_v36  ;;  %v756_v46 = vadd.f32 -0.1, %v99_v38  ;;  %v103_v54 = vld [vmem:[#allocation2 + $0x280] sm:$0xff] }
  0x4f   :  { %v757_v47 = vadd.f32 -0.1, %v100_v39  ;;  %v758_v48 = vadd.f32 -0.1, %v101_v44  ;;  %v479_v49 = vmul.f32 %v351_v40, %v351_v40  ;;  %v480_v50 = vmul.f32 %v352_v41, %v352_v41  ;;  %v104_v55 = vld [vmem:[#allocation2 + $0x288] sm:$0xff]  ;;  %v105_v60 = vld [vmem:[#allocation2 + $0x290] sm:$0xff] }
  0x50   :  { %v481_v51 = vmul.f32 %v353_v42, %v353_v42  ;;  %v354_v52 = vmax.f32 %v755_v43, 0.0  ;;  %606 = vst [vmem:[#allocation5 + $0x238] sm:$0xff] %v478_v45  ;;  %v355_v56 = vmax.f32 %v756_v46, 0.0  ;;  %v759_v59 = vadd.f32 -0.1, %v102_v53  ;;  %v106_v5 = vld [vmem:[#allocation2 + $0x298] sm:$0xff] }
  0x51   :  { %v356_v57 = vmax.f32 %v757_v47, 0.0  ;;  %v357_v58 = vmax.f32 %v758_v48, 0.0  ;;  %607 = vst [vmem:[#allocation5 + $0x240] sm:$0xff] %v479_v49  ;;  %608 = vst [vmem:[#allocation5 + $0x248] sm:$0xff] %v480_v50  ;;  %v760_v62 = vadd.f32 -0.1, %v103_v54 }
  0x52   :  { %609 = vst [vmem:[#allocation5 + $0x250] sm:$0xff] %v481_v51  ;;  %v482_v61 = vmul.f32 %v354_v52, %v354_v52  ;;  %v761_v63 = vadd.f32 -0.1, %v104_v55  ;;  %v762_v0 = vadd.f32 -0.1, %v105_v60  ;;  %v483_v1 = vmul.f32 %v355_v56, %v355_v56  ;;  %v107_v6 = vld [vmem:[#allocation2 + $0x2a0] sm:$0xff] }
  0x53   :  { %v484_v2 = vmul.f32 %v356_v57, %v356_v57  ;;  %v485_v3 = vmul.f32 %v357_v58, %v357_v58  ;;  %v358_v4 = vmax.f32 %v759_v59, 0.0  ;;  %v108_v7 = vld [vmem:[#allocation2 + $0x2a8] sm:$0xff]  ;;  %v359_v8 = vmax.f32 %v760_v62, 0.0  ;;  %v109_v12 = vld [vmem:[#allocation2 + $0x2b0] sm:$0xff]  ;;  %v110_v21 = vld [vmem:[#allocation2 + $0x2b8] sm:$0xff] }
  0x54   :  { %610 = vst [vmem:[#allocation5 + $0x258] sm:$0xff] %v482_v61  ;;  %v360_v9 = vmax.f32 %v761_v63, 0.0  ;;  %v361_v10 = vmax.f32 %v762_v0, 0.0  ;;  %v763_v11 = vadd.f32 -0.1, %v106_v5  ;;  %611 = vst [vmem:[#allocation5 + $0x260] sm:$0xff] %v483_v1 }
  0x55   :  { %612 = vst [vmem:[#allocation5 + $0x268] sm:$0xff] %v484_v2  ;;  %613 = vst [vmem:[#allocation5 + $0x270] sm:$0xff] %v485_v3  ;;  %v486_v13 = vmul.f32 %v358_v4, %v358_v4  ;;  %v764_v14 = vadd.f32 -0.1, %v107_v6  ;;  %v765_v15 = vadd.f32 -0.1, %v108_v7  ;;  %v487_v17 = vmul.f32 %v359_v8, %v359_v8 }
  0x56   :  { %v766_v16 = vadd.f32 -0.1, %v109_v12  ;;  %v488_v18 = vmul.f32 %v360_v9, %v360_v9  ;;  %v489_v19 = vmul.f32 %v361_v10, %v361_v10  ;;  %v362_v20 = vmax.f32 %v763_v11, 0.0  ;;  %v111_v22 = vld [vmem:[#allocation2 + $0x2c0] sm:$0xff]  ;;  %v112_v23 = vld [vmem:[#allocation2 + $0x2c8] sm:$0xff]  ;;  %v113_v28 = vld [vmem:[#allocation2 + $0x2d0] sm:$0xff] }
  0x57   :  { %614 = vst [vmem:[#allocation5 + $0x278] sm:$0xff] %v486_v13  ;;  %v363_v24 = vmax.f32 %v764_v14, 0.0  ;;  %v364_v25 = vmax.f32 %v765_v15, 0.0  ;;  %v767_v27 = vadd.f32 -0.1, %v110_v21  ;;  %615 = vst [vmem:[#allocation5 + $0x280] sm:$0xff] %v487_v17 }
  0x58   :  { %v365_v26 = vmax.f32 %v766_v16, 0.0  ;;  %616 = vst [vmem:[#allocation5 + $0x288] sm:$0xff] %v488_v18  ;;  %617 = vst [vmem:[#allocation5 + $0x290] sm:$0xff] %v489_v19  ;;  %v490_v29 = vmul.f32 %v362_v20, %v362_v20  ;;  %v768_v30 = vadd.f32 -0.1, %v111_v22  ;;  %v114_v37 = vld [vmem:[#allocation2 + $0x2d8] sm:$0xff] }
  0x59   :  { %v769_v31 = vadd.f32 -0.1, %v112_v23  ;;  %v770_v32 = vadd.f32 -0.1, %v113_v28  ;;  %v491_v33 = vmul.f32 %v363_v24, %v363_v24  ;;  %v492_v34 = vmul.f32 %v364_v25, %v364_v25  ;;  %v115_v38 = vld [vmem:[#allocation2 + $0x2e0] sm:$0xff]  ;;  %v116_v39 = vld [vmem:[#allocation2 + $0x2e8] sm:$0xff] }
  0x5a   :  { %v493_v35 = vmul.f32 %v365_v26, %v365_v26  ;;  %v366_v36 = vmax.f32 %v767_v27, 0.0  ;;  %618 = vst [vmem:[#allocation5 + $0x298] sm:$0xff] %v490_v29  ;;  %v367_v40 = vmax.f32 %v768_v30, 0.0  ;;  %v771_v43 = vadd.f32 -0.1, %v114_v37  ;;  %v117_v44 = vld [vmem:[#allocation2 + $0x2f0] sm:$0xff] }
  0x5b   :  { %v368_v41 = vmax.f32 %v769_v31, 0.0  ;;  %v369_v42 = vmax.f32 %v770_v32, 0.0  ;;  %619 = vst [vmem:[#allocation5 + $0x2a0] sm:$0xff] %v491_v33  ;;  %620 = vst [vmem:[#allocation5 + $0x2a8] sm:$0xff] %v492_v34  ;;  %v772_v46 = vadd.f32 -0.1, %v115_v38 }
  0x5c   :  { %621 = vst [vmem:[#allocation5 + $0x2b0] sm:$0xff] %v493_v35  ;;  %v494_v45 = vmul.f32 %v366_v36, %v366_v36  ;;  %v773_v47 = vadd.f32 -0.1, %v116_v39  ;;  %v774_v48 = vadd.f32 -0.1, %v117_v44  ;;  %v495_v49 = vmul.f32 %v367_v40, %v367_v40  ;;  %v118_v53 = vld [vmem:[#allocation2 + $0x2f8] sm:$0xff] }
  0x5d   :  { %v496_v50 = vmul.f32 %v368_v41, %v368_v41  ;;  %v497_v51 = vmul.f32 %v369_v42, %v369_v42  ;;  %v370_v52 = vmax.f32 %v771_v43, 0.0  ;;  %v119_v54 = vld [vmem:[#allocation2 + $0x300] sm:$0xff]  ;;  %v120_v55 = vld [vmem:[#allocation2 + $0x308] sm:$0xff]  ;;  %v371_v56 = vmax.f32 %v772_v46, 0.0  ;;  %v121_v60 = vld [vmem:[#allocation2 + $0x310] sm:$0xff] }
  0x5e   :  { %622 = vst [vmem:[#allocation5 + $0x2b8] sm:$0xff] %v494_v45  ;;  %v372_v57 = vmax.f32 %v773_v47, 0.0  ;;  %v373_v58 = vmax.f32 %v774_v48, 0.0  ;;  %v775_v59 = vadd.f32 -0.1, %v118_v53  ;;  %623 = vst [vmem:[#allocation5 + $0x2c0] sm:$0xff] %v495_v49 }
  0x5f   :  { %624 = vst [vmem:[#allocation5 + $0x2c8] sm:$0xff] %v496_v50  ;;  %625 = vst [vmem:[#allocation5 + $0x2d0] sm:$0xff] %v497_v51  ;;  %v498_v61 = vmul.f32 %v370_v52, %v370_v52  ;;  %v776_v62 = vadd.f32 -0.1, %v119_v54  ;;  %v777_v63 = vadd.f32 -0.1, %v120_v55  ;;  %v499_v1 = vmul.f32 %v371_v56, %v371_v56 }
  0x60   :  { %v778_v0 = vadd.f32 -0.1, %v121_v60  ;;  %v500_v2 = vmul.f32 %v372_v57, %v372_v57  ;;  %v501_v3 = vmul.f32 %v373_v58, %v373_v58  ;;  %v374_v4 = vmax.f32 %v775_v59, 0.0  ;;  %v122_v5 = vld [vmem:[#allocation2 + $0x318] sm:$0xff]  ;;  %v123_v6 = vld [vmem:[#allocation2 + $0x320] sm:$0xff]  ;;  %v124_v7 = vld [vmem:[#allocation2 + $0x328] sm:$0xff] }
  0x61   :  { %626 = vst [vmem:[#allocation5 + $0x2d8] sm:$0xff] %v498_v61  ;;  %v375_v8 = vmax.f32 %v776_v62, 0.0  ;;  %v376_v9 = vmax.f32 %v777_v63, 0.0  ;;  %v779_v11 = vadd.f32 -0.1, %v122_v5  ;;  %v125_v12 = vld [vmem:[#allocation2 + $0x330] sm:$0xff] }
  0x62   :  { %v377_v10 = vmax.f32 %v778_v0, 0.0  ;;  %627 = vst [vmem:[#allocation5 + $0x2e0] sm:$0xff] %v499_v1  ;;  %628 = vst [vmem:[#allocation5 + $0x2e8] sm:$0xff] %v500_v2  ;;  %v502_v13 = vmul.f32 %v374_v4, %v374_v4  ;;  %v780_v14 = vadd.f32 -0.1, %v123_v6  ;;  %v126_v21 = vld [vmem:[#allocation2 + $0x338] sm:$0xff] }
  0x63   :  { %629 = vst [vmem:[#allocation5 + $0x2f0] sm:$0xff] %v501_v3  ;;  %v781_v15 = vadd.f32 -0.1, %v124_v7  ;;  %v782_v16 = vadd.f32 -0.1, %v125_v12  ;;  %v503_v17 = vmul.f32 %v375_v8, %v375_v8  ;;  %v504_v18 = vmul.f32 %v376_v9, %v376_v9  ;;  %v127_v22 = vld [vmem:[#allocation2 + $0x340] sm:$0xff] }
  0x64   :  { %v505_v19 = vmul.f32 %v377_v10, %v377_v10  ;;  %v378_v20 = vmax.f32 %v779_v11, 0.0  ;;  %v128_v23 = vld [vmem:[#allocation2 + $0x348] sm:$0xff]  ;;  %630 = vst [vmem:[#allocation5 + $0x2f8] sm:$0xff] %v502_v13  ;;  %v379_v24 = vmax.f32 %v780_v14, 0.0  ;;  %v783_v27 = vadd.f32 -0.1, %v126_v21 }
  0x65   :  { %v380_v25 = vmax.f32 %v781_v15, 0.0  ;;  %v381_v26 = vmax.f32 %v782_v16, 0.0  ;;  %v129_v28 = vld [vmem:[#allocation2 + $0x350] sm:$0xff]  ;;  %631 = vst [vmem:[#allocation5 + $0x300] sm:$0xff] %v503_v17  ;;  %632 = vst [vmem:[#allocation5 + $0x308] sm:$0xff] %v504_v18  ;;  %v130_v37 = vld [vmem:[#allocation2 + $0x358] sm:$0xff] }
  0x66   :  { %633 = vst [vmem:[#allocation5 + $0x310] sm:$0xff] %v505_v19  ;;  %v506_v29 = vmul.f32 %v378_v20, %v378_v20  ;;  %v784_v30 = vadd.f32 -0.1, %v127_v22  ;;  %v785_v31 = vadd.f32 -0.1, %v128_v23  ;;  %v507_v33 = vmul.f32 %v379_v24, %v379_v24  ;;  %v131_v38 = vld [vmem:[#allocation2 + $0x360] sm:$0xff] }
  0x67   :  { %v786_v32 = vadd.f32 -0.1, %v129_v28  ;;  %v508_v34 = vmul.f32 %v380_v25, %v380_v25  ;;  %v509_v35 = vmul.f32 %v381_v26, %v381_v26  ;;  %v382_v36 = vmax.f32 %v783_v27, 0.0  ;;  %v132_v39 = vld [vmem:[#allocation2 + $0x368] sm:$0xff]  ;;  %v133_v44 = vld [vmem:[#allocation2 + $0x370] sm:$0xff]  ;;  %v134_v53 = vld [vmem:[#allocation2 + $0x378] sm:$0xff] }
  0x68   :  { %634 = vst [vmem:[#allocation5 + $0x318] sm:$0xff] %v506_v29  ;;  %v383_v40 = vmax.f32 %v784_v30, 0.0  ;;  %v384_v41 = vmax.f32 %v785_v31, 0.0  ;;  %v787_v43 = vadd.f32 -0.1, %v130_v37  ;;  %635 = vst [vmem:[#allocation5 + $0x320] sm:$0xff] %v507_v33 }
  0x69   :  { %v385_v42 = vmax.f32 %v786_v32, 0.0  ;;  %636 = vst [vmem:[#allocation5 + $0x328] sm:$0xff] %v508_v34  ;;  %637 = vst [vmem:[#allocation5 + $0x330] sm:$0xff] %v509_v35  ;;  %v510_v45 = vmul.f32 %v382_v36, %v382_v36  ;;  %v788_v46 = vadd.f32 -0.1, %v131_v38  ;;  %v135_v54 = vld [vmem:[#allocation2 + $0x380] sm:$0xff] }
  0x6a   :  { %v789_v47 = vadd.f32 -0.1, %v132_v39  ;;  %v790_v48 = vadd.f32 -0.1, %v133_v44  ;;  %v511_v49 = vmul.f32 %v383_v40, %v383_v40  ;;  %v512_v50 = vmul.f32 %v384_v41, %v384_v41  ;;  %v136_v55 = vld [vmem:[#allocation2 + $0x388] sm:$0xff]  ;;  %v137_v60 = vld [vmem:[#allocation2 + $0x390] sm:$0xff] }
  0x6b   :  { %v513_v51 = vmul.f32 %v385_v42, %v385_v42  ;;  %v386_v52 = vmax.f32 %v787_v43, 0.0  ;;  %638 = vst [vmem:[#allocation5 + $0x338] sm:$0xff] %v510_v45  ;;  %v387_v56 = vmax.f32 %v788_v46, 0.0  ;;  %v791_v59 = vadd.f32 -0.1, %v134_v53  ;;  %v138_v5 = vld [vmem:[#allocation2 + $0x398] sm:$0xff] }
  0x6c   :  { %v388_v57 = vmax.f32 %v789_v47, 0.0  ;;  %v389_v58 = vmax.f32 %v790_v48, 0.0  ;;  %639 = vst [vmem:[#allocation5 + $0x340] sm:$0xff] %v511_v49  ;;  %640 = vst [vmem:[#allocation5 + $0x348] sm:$0xff] %v512_v50  ;;  %v792_v62 = vadd.f32 -0.1, %v135_v54 }
  0x6d   :  { %641 = vst [vmem:[#allocation5 + $0x350] sm:$0xff] %v513_v51  ;;  %v514_v61 = vmul.f32 %v386_v52, %v386_v52  ;;  %v793_v63 = vadd.f32 -0.1, %v136_v55  ;;  %v794_v0 = vadd.f32 -0.1, %v137_v60  ;;  %v515_v1 = vmul.f32 %v387_v56, %v387_v56  ;;  %v139_v6 = vld [vmem:[#allocation2 + $0x3a0] sm:$0xff] }
  0x6e   :  { %v516_v2 = vmul.f32 %v388_v57, %v388_v57  ;;  %v517_v3 = vmul.f32 %v389_v58, %v389_v58  ;;  %v390_v4 = vmax.f32 %v791_v59, 0.0  ;;  %v140_v7 = vld [vmem:[#allocation2 + $0x3a8] sm:$0xff]  ;;  %v391_v8 = vmax.f32 %v792_v62, 0.0  ;;  %v141_v12 = vld [vmem:[#allocation2 + $0x3b0] sm:$0xff]  ;;  %v142_v21 = vld [vmem:[#allocation2 + $0x3b8] sm:$0xff] }
  0x6f   :  { %642 = vst [vmem:[#allocation5 + $0x358] sm:$0xff] %v514_v61  ;;  %v392_v9 = vmax.f32 %v793_v63, 0.0  ;;  %v393_v10 = vmax.f32 %v794_v0, 0.0  ;;  %v795_v11 = vadd.f32 -0.1, %v138_v5  ;;  %643 = vst [vmem:[#allocation5 + $0x360] sm:$0xff] %v515_v1 }
  0x70   :  { %644 = vst [vmem:[#allocation5 + $0x368] sm:$0xff] %v516_v2  ;;  %645 = vst [vmem:[#allocation5 + $0x370] sm:$0xff] %v517_v3  ;;  %v518_v13 = vmul.f32 %v390_v4, %v390_v4  ;;  %v796_v14 = vadd.f32 -0.1, %v139_v6  ;;  %v797_v15 = vadd.f32 -0.1, %v140_v7  ;;  %v519_v17 = vmul.f32 %v391_v8, %v391_v8 }
  0x71   :  { %v798_v16 = vadd.f32 -0.1, %v141_v12  ;;  %v520_v18 = vmul.f32 %v392_v9, %v392_v9  ;;  %v521_v19 = vmul.f32 %v393_v10, %v393_v10  ;;  %v394_v20 = vmax.f32 %v795_v11, 0.0  ;;  %v143_v22 = vld [vmem:[#allocation2 + $0x3c0] sm:$0xff]  ;;  %v144_v23 = vld [vmem:[#allocation2 + $0x3c8] sm:$0xff]  ;;  %v145_v28 = vld [vmem:[#allocation2 + $0x3d0] sm:$0xff] }
  0x72   :  { %646 = vst [vmem:[#allocation5 + $0x378] sm:$0xff] %v518_v13  ;;  %v395_v24 = vmax.f32 %v796_v14, 0.0  ;;  %v396_v25 = vmax.f32 %v797_v15, 0.0  ;;  %v799_v27 = vadd.f32 -0.1, %v142_v21  ;;  %647 = vst [vmem:[#allocation5 + $0x380] sm:$0xff] %v519_v17 }
  0x73   :  { %v397_v26 = vmax.f32 %v798_v16, 0.0  ;;  %648 = vst [vmem:[#allocation5 + $0x388] sm:$0xff] %v520_v18  ;;  %649 = vst [vmem:[#allocation5 + $0x390] sm:$0xff] %v521_v19  ;;  %v522_v29 = vmul.f32 %v394_v20, %v394_v20  ;;  %v800_v30 = vadd.f32 -0.1, %v143_v22  ;;  %v146_v37 = vld [vmem:[#allocation2 + $0x3d8] sm:$0xff] }
  0x74   :  { %v801_v31 = vadd.f32 -0.1, %v144_v23  ;;  %v802_v32 = vadd.f32 -0.1, %v145_v28  ;;  %v523_v33 = vmul.f32 %v395_v24, %v395_v24  ;;  %v524_v34 = vmul.f32 %v396_v25, %v396_v25  ;;  %v147_v38 = vld [vmem:[#allocation2 + $0x3e0] sm:$0xff]  ;;  %v148_v39 = vld [vmem:[#allocation2 + $0x3e8] sm:$0xff] }
  0x75   :  { %v525_v35 = vmul.f32 %v397_v26, %v397_v26  ;;  %v398_v36 = vmax.f32 %v799_v27, 0.0  ;;  %650 = vst [vmem:[#allocation5 + $0x398] sm:$0xff] %v522_v29  ;;  %v399_v40 = vmax.f32 %v800_v30, 0.0  ;;  %v803_v43 = vadd.f32 -0.1, %v146_v37  ;;  %v149_v44 = vld [vmem:[#allocation2 + $0x3f0] sm:$0xff] }
  0x76   :  { %v400_v41 = vmax.f32 %v801_v31, 0.0  ;;  %v401_v42 = vmax.f32 %v802_v32, 0.0  ;;  %651 = vst [vmem:[#allocation5 + $0x3a0] sm:$0xff] %v523_v33  ;;  %652 = vst [vmem:[#allocation5 + $0x3a8] sm:$0xff] %v524_v34  ;;  %v804_v46 = vadd.f32 -0.1, %v147_v38 }
  0x77   :  { %653 = vst [vmem:[#allocation5 + $0x3b0] sm:$0xff] %v525_v35  ;;  %v526_v45 = vmul.f32 %v398_v36, %v398_v36  ;;  %v805_v47 = vadd.f32 -0.1, %v148_v39  ;;  %v806_v48 = vadd.f32 -0.1, %v149_v44  ;;  %v527_v49 = vmul.f32 %v399_v40, %v399_v40  ;;  %v150_v53 = vld [vmem:[#allocation2 + $0x3f8] sm:$0xff] }
  0x78   :  { %v528_v50 = vmul.f32 %v400_v41, %v400_v41  ;;  %v529_v51 = vmul.f32 %v401_v42, %v401_v42  ;;  %v402_v52 = vmax.f32 %v803_v43, 0.0  ;;  %v403_v54 = vmax.f32 %v804_v46, 0.0 }
  0x79   :  { %654 = vst [vmem:[#allocation5 + $0x3b8] sm:$0xff] %v526_v45  ;;  %v404_v55 = vmax.f32 %v805_v47, 0.0  ;;  %v405_v56 = vmax.f32 %v806_v48, 0.0  ;;  %v807_v57 = vadd.f32 -0.1, %v150_v53  ;;  %655 = vst [vmem:[#allocation5 + $0x3c0] sm:$0xff] %v527_v49 }
  0x7a   :  { %656 = vst [vmem:[#allocation5 + $0x3c8] sm:$0xff] %v528_v50  ;;  %657 = vst [vmem:[#allocation5 + $0x3d0] sm:$0xff] %v529_v51  ;;  %v530_v58 = vmul.f32 %v402_v52, %v402_v52  ;;  %v531_v59 = vmul.f32 %v403_v54, %v403_v54 }
  0x7b   :  { %v532_v60 = vmul.f32 %v404_v55, %v404_v55  ;;  %v533_v61 = vmul.f32 %v405_v56, %v405_v56  ;;  %v406_v62 = vmax.f32 %v807_v57, 0.0 }
  0x7c   :  { %658 = vst [vmem:[#allocation5 + $0x3d8] sm:$0xff] %v530_v58  ;;  %659 = vst [vmem:[#allocation5 + $0x3e0] sm:$0xff] %v531_v59 }
  0x7d   :  { %660 = vst [vmem:[#allocation5 + $0x3e8] sm:$0xff] %v532_v60  ;;  %661 = vst [vmem:[#allocation5 + $0x3f0] sm:$0xff] %v533_v61  ;;  %v534_v63 = vmul.f32 %v406_v62, %v406_v62 }
  0x7f   :  { %662 = vst [vmem:[#allocation5 + $0x3f8] sm:$0xff] %v534_v63 }
  0x80   :  { %843 = shalt.err (!%p840_p9)
}
  0x81   :  { %674 = dma.vmem_to_hbm [thread:$0]  %s669_s13, 16384, %s883_s1, [#allocation4], %s857_s9, %s857_s9, %s858_s10  }
  0x82   :  { %854 = dma.done.wait [#allocation4], 16384  }
  0x83   :  { %855 = vsyncadd [#allocation4], 4294950912 }
  0x84   :  { %678 = vsyncpa [#allocation3], 1 }
  0x85   :  { %679 = vsyncpa [#allocation4], 1 }

</bundles_post_ra>
